<compile_context>
chip_gen: v7x
topology: tpu7x:2x2x1
jax: 0.10.0
libtpu: 0.0.40
codegen_flags: <defaults>
</compile_context>

<pallas_src>
import jax
import jax.numpy as jnp
from jax.experimental import pallas as pl
from jax.experimental.pallas import tpu as pltpu


def _make_kernel(Nb, Cin, Cout):
    """Fused 1x1-conv * mask kernel over lane-dense (C, H*W) planes."""

    def kernel(w_ref, b_ref, x_ref, m_ref, o_ref):
        # w_ref: SMEM (Cout, Cin) f32      — conv weight (1x1 squeezed)
        # b_ref: SMEM (Cout,)    f32       — conv bias
        # x_ref: VMEM (Nb, Cin, HW) f32    — Nb images, flattened spatial
        # m_ref: VMEM (Nb, Cout, HW) f32   — `padding` argument (pre-F.pad)
        # o_ref: VMEM (Nb, Cout, HW) f32   — interior of the output
        for n in range(Nb):
            # Hoist the Cin plane loads out of the Cout loop (8 loads, reused
            # by all 4 output channels).
            xs = [x_ref[n, ci] for ci in range(Cin)]
            for co in range(Cout):
                acc = w_ref[co, 0] * xs[0]
                for ci in range(1, Cin):
                    acc = acc + w_ref[co, ci] * xs[ci]
                o_ref[n, co] = ((acc + b_ref[co]) * m_ref[n, co]).astype(
                    o_ref.dtype)

    return kernel


@jax.jit
def model_forward(x, weight, bias, padding):
    """x: [N, Cin, H, W], weight: [Cout, Cin, 1, 1], bias: [Cout],
    padding: [N, Cout, H, W].  Returns [N, Cout, H+2, W+2] (NCHW)."""
    N, Cin, H, W = x.shape
    Cout = weight.shape[0]
    HW = H * W

    # At most 2 grid steps: uses both v7x TensorCores, negligible per-step
    # overhead on single-TC v5e/v6e.
    Nb = N // 2 if (N % 2 == 0 and N >= 2) else 1
    grid = (N // Nb,)

    # Small glue only: squeeze the 1x1 taps (32 scalars) and flatten the
    # spatial dims into a lane-dense last axis (no data movement beyond a
    # reshape; no transposes).
    w_mat = weight.reshape(Cout, Cin).astype(jnp.float32)
    b_vec = bias.astype(jnp.float32)
    x_flat = x.reshape(N, Cin, HW)
    m_flat = padding.reshape(N, Cout, HW)

    kernel = _make_kernel(Nb, Cin, Cout)

    interior = pl.pallas_call(
        kernel,
        out_shape=jax.ShapeDtypeStruct((N, Cout, HW), jnp.float32),
        grid=grid,
        in_specs=[
            pl.BlockSpec(memory_space=pltpu.MemorySpace.SMEM),            # weight
            pl.BlockSpec(memory_space=pltpu.MemorySpace.SMEM),            # bias
            pl.BlockSpec((Nb, Cin, HW), lambda i: (i, 0, 0)),             # x
            pl.BlockSpec((Nb, Cout, HW), lambda i: (i, 0, 0)),            # padding
        ],
        out_specs=pl.BlockSpec((Nb, Cout, HW), lambda i: (i, 0, 0)),
        compiler_params=pltpu.CompilerParams(
            dimension_semantics=("parallel",)),
    )(w_mat, b_vec, x_flat, m_flat)

    # Zero 1-pixel border (F.pad of the mask zeroes the conv's padded ring).
    interior = interior.reshape(N, Cout, H, W)
    return jnp.pad(interior, ((0, 0), (0, 0), (1, 1), (1, 1)))


def _reference(x, weight, bias, padding):
    """Pure-JAX reference of the same semantics (for verification)."""
    x_pad = jnp.pad(x, ((0, 0), (0, 0), (1, 1), (1, 1)))
    w = weight.reshape(weight.shape[0], weight.shape[1])                 # [Cout, Cin]
    v = jnp.einsum("nchw,oc->nohw", x_pad, w) + bias[None, :, None, None]
    mask = jnp.pad(padding, ((0, 0), (0, 0), (1, 1), (1, 1)))
    return v * mask


if __name__ == "__main__":
    key = jax.random.PRNGKey(0)
    k_x, k_p, k_w, k_b = jax.random.split(key, 4)

    # Small shapes consistent with Conv2d(8, 4, 1, stride=1, padding=1).
    N, Cin, Cout, H, W = 2, 8, 4, 16, 16
    x = jax.random.uniform(k_x, (N, Cin, H, W), dtype=jnp.float32)
    # Explicit `padding` arg with spatial (H, W) so F.pad makes it match v.
    padding = jax.random.uniform(k_p, (N, Cout, H, W), dtype=jnp.float32)

    # Deterministic parameter init (Conv2d(8,4,1): weight [4,8,1,1], bias [4]).
    fan_in = Cin * 1 * 1
    bound = 1.0 / (fan_in ** 0.5)
    weight = jax.random.uniform(k_w, (Cout, Cin, 1, 1), dtype=jnp.float32,
                                minval=-bound, maxval=bound)
    bias = jax.random.uniform(k_b, (Cout,), dtype=jnp.float32,
                              minval=-bound, maxval=bound)

    out = model_forward(x, weight, bias, padding)
    out = jax.block_until_ready(out)

    ref = _reference(x, weight, bias, padding)
    assert out.shape == (N, Cout, H + 2, W + 2), out.shape
    assert jnp.allclose(out, ref, atol=1e-5, rtol=1e-5), "mismatch vs reference"

    print("KERNEL_OK")
</pallas_src>

<mosaic_0001>
module attributes {stable_mosaic.version = 11 : i64} {
  func.func @kernel(%arg0: i32, %arg1: memref<4x8xf32, #tpu.memory_space<smem>>, %arg2: memref<4xf32, #tpu.memory_space<smem>>, %arg3: memref<1x8x256xf32, #tpu.memory_space<vmem>>, %arg4: memref<1x4x256xf32, #tpu.memory_space<vmem>>, %arg5: memref<1x4x256xf32, #tpu.memory_space<vmem>>) attributes {dimension_semantics = [#tpu.dimension_semantics<parallel>], iteration_bounds = array<i64: 2>, scalar_prefetch = 0 : i64, scratch_operands = 0 : i64, tpu.core_type = #tpu.core_type<tc>, window_params = [{transform_indices = @transform_0, window_bounds = array<i64: 4, 8>}, {transform_indices = @transform_1, window_bounds = array<i64: 4>}, {transform_indices = @transform_2, window_bounds = array<i64: 1, 8, 256>}, {transform_indices = @transform_3, window_bounds = array<i64: 1, 4, 256>}, {transform_indices = @transform_4, window_bounds = array<i64: 1, 4, 256>}]} {
    %c0 = arith.constant 0 : index
    %c0_0 = arith.constant 0 : index
    %c0_1 = arith.constant 0 : index
    %0 = vector.load %arg3[%c0, %c0_0, %c0_1] : memref<1x8x256xf32, #tpu.memory_space<vmem>>, vector<1x1x256xf32>
    %1 = vector.shape_cast %0 : vector<1x1x256xf32> to vector<256xf32>
    %c0_2 = arith.constant 0 : index
    %c1 = arith.constant 1 : index
    %c0_3 = arith.constant 0 : index
    %2 = vector.load %arg3[%c0_2, %c1, %c0_3] : memref<1x8x256xf32, #tpu.memory_space<vmem>>, vector<1x1x256xf32>
    %3 = vector.shape_cast %2 : vector<1x1x256xf32> to vector<256xf32>
    %c0_4 = arith.constant 0 : index
    %c2 = arith.constant 2 : index
    %c0_5 = arith.constant 0 : index
    %4 = vector.load %arg3[%c0_4, %c2, %c0_5] : memref<1x8x256xf32, #tpu.memory_space<vmem>>, vector<1x1x256xf32>
    %5 = vector.shape_cast %4 : vector<1x1x256xf32> to vector<256xf32>
    %c0_6 = arith.constant 0 : index
    %c3 = arith.constant 3 : index
    %c0_7 = arith.constant 0 : index
    %6 = vector.load %arg3[%c0_6, %c3, %c0_7] : memref<1x8x256xf32, #tpu.memory_space<vmem>>, vector<1x1x256xf32>
    %7 = vector.shape_cast %6 : vector<1x1x256xf32> to vector<256xf32>
    %c0_8 = arith.constant 0 : index
    %c4 = arith.constant 4 : index
    %c0_9 = arith.constant 0 : index
    %8 = vector.load %arg3[%c0_8, %c4, %c0_9] : memref<1x8x256xf32, #tpu.memory_space<vmem>>, vector<1x1x256xf32>
    %9 = vector.shape_cast %8 : vector<1x1x256xf32> to vector<256xf32>
    %c0_10 = arith.constant 0 : index
    %c5 = arith.constant 5 : index
    %c0_11 = arith.constant 0 : index
    %10 = vector.load %arg3[%c0_10, %c5, %c0_11] : memref<1x8x256xf32, #tpu.memory_space<vmem>>, vector<1x1x256xf32>
    %11 = vector.shape_cast %10 : vector<1x1x256xf32> to vector<256xf32>
    %c0_12 = arith.constant 0 : index
    %c6 = arith.constant 6 : index
    %c0_13 = arith.constant 0 : index
    %12 = vector.load %arg3[%c0_12, %c6, %c0_13] : memref<1x8x256xf32, #tpu.memory_space<vmem>>, vector<1x1x256xf32>
    %13 = vector.shape_cast %12 : vector<1x1x256xf32> to vector<256xf32>
    %c0_14 = arith.constant 0 : index
    %c7 = arith.constant 7 : index
    %c0_15 = arith.constant 0 : index
    %14 = vector.load %arg3[%c0_14, %c7, %c0_15] : memref<1x8x256xf32, #tpu.memory_space<vmem>>, vector<1x1x256xf32>
    %15 = vector.shape_cast %14 : vector<1x1x256xf32> to vector<256xf32>
    %c0_16 = arith.constant 0 : index
    %c0_17 = arith.constant 0 : index
    %16 = memref.load %arg1[%c0_16, %c0_17] : memref<4x8xf32, #tpu.memory_space<smem>>
    %17 = vector.broadcast %16 : f32 to vector<256xf32>
    %18 = arith.mulf %17, %1 : vector<256xf32>
    %c0_18 = arith.constant 0 : index
    %c1_19 = arith.constant 1 : index
    %19 = memref.load %arg1[%c0_18, %c1_19] : memref<4x8xf32, #tpu.memory_space<smem>>
    %20 = vector.broadcast %19 : f32 to vector<256xf32>
    %21 = arith.mulf %20, %3 : vector<256xf32>
    %22 = arith.addf %18, %21 : vector<256xf32>
    %c0_20 = arith.constant 0 : index
    %c2_21 = arith.constant 2 : index
    %23 = memref.load %arg1[%c0_20, %c2_21] : memref<4x8xf32, #tpu.memory_space<smem>>
    %24 = vector.broadcast %23 : f32 to vector<256xf32>
    %25 = arith.mulf %24, %5 : vector<256xf32>
    %26 = arith.addf %22, %25 : vector<256xf32>
    %c0_22 = arith.constant 0 : index
    %c3_23 = arith.constant 3 : index
    %27 = memref.load %arg1[%c0_22, %c3_23] : memref<4x8xf32, #tpu.memory_space<smem>>
    %28 = vector.broadcast %27 : f32 to vector<256xf32>
    %29 = arith.mulf %28, %7 : vector<256xf32>
    %30 = arith.addf %26, %29 : vector<256xf32>
    %c0_24 = arith.constant 0 : index
    %c4_25 = arith.constant 4 : index
    %31 = memref.load %arg1[%c0_24, %c4_25] : memref<4x8xf32, #tpu.memory_space<smem>>
    %32 = vector.broadcast %31 : f32 to vector<256xf32>
    %33 = arith.mulf %32, %9 : vector<256xf32>
    %34 = arith.addf %30, %33 : vector<256xf32>
    %c0_26 = arith.constant 0 : index
    %c5_27 = arith.constant 5 : index
    %35 = memref.load %arg1[%c0_26, %c5_27] : memref<4x8xf32, #tpu.memory_space<smem>>
    %36 = vector.broadcast %35 : f32 to vector<256xf32>
    %37 = arith.mulf %36, %11 : vector<256xf32>
    %38 = arith.addf %34, %37 : vector<256xf32>
    %c0_28 = arith.constant 0 : index
    %c6_29 = arith.constant 6 : index
    %39 = memref.load %arg1[%c0_28, %c6_29] : memref<4x8xf32, #tpu.memory_space<smem>>
    %40 = vector.broadcast %39 : f32 to vector<256xf32>
    %41 = arith.mulf %40, %13 : vector<256xf32>
    %42 = arith.addf %38, %41 : vector<256xf32>
    %c0_30 = arith.constant 0 : index
    %c7_31 = arith.constant 7 : index
    %43 = memref.load %arg1[%c0_30, %c7_31] : memref<4x8xf32, #tpu.memory_space<smem>>
    %44 = vector.broadcast %43 : f32 to vector<256xf32>
    %45 = arith.mulf %44, %15 : vector<256xf32>
    %46 = arith.addf %42, %45 : vector<256xf32>
    %c0_32 = arith.constant 0 : index
    %47 = memref.load %arg2[%c0_32] : memref<4xf32, #tpu.memory_space<smem>>
    %48 = vector.broadcast %47 : f32 to vector<256xf32>
    %49 = arith.addf %46, %48 : vector<256xf32>
    %c0_33 = arith.constant 0 : index
    %c0_34 = arith.constant 0 : index
    %c0_35 = arith.constant 0 : index
    %50 = vector.load %arg4[%c0_33, %c0_34, %c0_35] : memref<1x4x256xf32, #tpu.memory_space<vmem>>, vector<1x1x256xf32>
    %51 = vector.shape_cast %50 : vector<1x1x256xf32> to vector<256xf32>
    %52 = arith.mulf %49, %51 : vector<256xf32>
    %c0_36 = arith.constant 0 : index
    %c0_37 = arith.constant 0 : index
    %c0_38 = arith.constant 0 : index
    %53 = vector.load %arg5[%c0_36, %c0_37, %c0_38] : memref<1x4x256xf32, #tpu.memory_space<vmem>>, vector<1x1x256xf32>
    %54 = vector.shape_cast %53 : vector<1x1x256xf32> to vector<256xf32>
    %55 = vector.shape_cast %52 : vector<256xf32> to vector<1x1x256xf32>
    tpu.vector_store %arg5[%c0_36, %c0_37, %c0_38], %55 {strides = array<i32>} : memref<1x4x256xf32, #tpu.memory_space<vmem>>, vector<1x1x256xf32>,
    %c1_39 = arith.constant 1 : index
    %c0_40 = arith.constant 0 : index
    %56 = memref.load %arg1[%c1_39, %c0_40] : memref<4x8xf32, #tpu.memory_space<smem>>
    %57 = vector.broadcast %56 : f32 to vector<256xf32>
    %58 = arith.mulf %57, %1 : vector<256xf32>
    %c1_41 = arith.constant 1 : index
    %c1_42 = arith.constant 1 : index
    %59 = memref.load %arg1[%c1_41, %c1_42] : memref<4x8xf32, #tpu.memory_space<smem>>
    %60 = vector.broadcast %59 : f32 to vector<256xf32>
    %61 = arith.mulf %60, %3 : vector<256xf32>
    %62 = arith.addf %58, %61 : vector<256xf32>
    %c1_43 = arith.constant 1 : index
    %c2_44 = arith.constant 2 : index
    %63 = memref.load %arg1[%c1_43, %c2_44] : memref<4x8xf32, #tpu.memory_space<smem>>
    %64 = vector.broadcast %63 : f32 to vector<256xf32>
    %65 = arith.mulf %64, %5 : vector<256xf32>
    %66 = arith.addf %62, %65 : vector<256xf32>
    %c1_45 = arith.constant 1 : index
    %c3_46 = arith.constant 3 : index
    %67 = memref.load %arg1[%c1_45, %c3_46] : memref<4x8xf32, #tpu.memory_space<smem>>
    %68 = vector.broadcast %67 : f32 to vector<256xf32>
    %69 = arith.mulf %68, %7 : vector<256xf32>
    %70 = arith.addf %66, %69 : vector<256xf32>
    %c1_47 = arith.constant 1 : index
    %c4_48 = arith.constant 4 : index
    %71 = memref.load %arg1[%c1_47, %c4_48] : memref<4x8xf32, #tpu.memory_space<smem>>
    %72 = vector.broadcast %71 : f32 to vector<256xf32>
    %73 = arith.mulf %72, %9 : vector<256xf32>
    %74 = arith.addf %70, %73 : vector<256xf32>
    %c1_49 = arith.constant 1 : index
    %c5_50 = arith.constant 5 : index
    %75 = memref.load %arg1[%c1_49, %c5_50] : memref<4x8xf32, #tpu.memory_space<smem>>
    %76 = vector.broadcast %75 : f32 to vector<256xf32>
    %77 = arith.mulf %76, %11 : vector<256xf32>
    %78 = arith.addf %74, %77 : vector<256xf32>
    %c1_51 = arith.constant 1 : index
    %c6_52 = arith.constant 6 : index
    %79 = memref.load %arg1[%c1_51, %c6_52] : memref<4x8xf32, #tpu.memory_space<smem>>
    %80 = vector.broadcast %79 : f32 to vector<256xf32>
    %81 = arith.mulf %80, %13 : vector<256xf32>
    %82 = arith.addf %78, %81 : vector<256xf32>
    %c1_53 = arith.constant 1 : index
    %c7_54 = arith.constant 7 : index
    %83 = memref.load %arg1[%c1_53, %c7_54] : memref<4x8xf32, #tpu.memory_space<smem>>
    %84 = vector.broadcast %83 : f32 to vector<256xf32>
    %85 = arith.mulf %84, %15 : vector<256xf32>
    %86 = arith.addf %82, %85 : vector<256xf32>
    %c1_55 = arith.constant 1 : index
    %87 = memref.load %arg2[%c1_55] : memref<4xf32, #tpu.memory_space<smem>>
    %88 = vector.broadcast %87 : f32 to vector<256xf32>
    %89 = arith.addf %86, %88 : vector<256xf32>
    %c0_56 = arith.constant 0 : index
    %c1_57 = arith.constant 1 : index
    %c0_58 = arith.constant 0 : index
    %90 = vector.load %arg4[%c0_56, %c1_57, %c0_58] : memref<1x4x256xf32, #tpu.memory_space<vmem>>, vector<1x1x256xf32>
    %91 = vector.shape_cast %90 : vector<1x1x256xf32> to vector<256xf32>
    %92 = arith.mulf %89, %91 : vector<256xf32>
    %c0_59 = arith.constant 0 : index
    %c1_60 = arith.constant 1 : index
    %c0_61 = arith.constant 0 : index
    %93 = vector.load %arg5[%c0_59, %c1_60, %c0_61] : memref<1x4x256xf32, #tpu.memory_space<vmem>>, vector<1x1x256xf32>
    %94 = vector.shape_cast %93 : vector<1x1x256xf32> to vector<256xf32>
    %95 = vector.shape_cast %92 : vector<256xf32> to vector<1x1x256xf32>
    tpu.vector_store %arg5[%c0_59, %c1_60, %c0_61], %95 {strides = array<i32>} : memref<1x4x256xf32, #tpu.memory_space<vmem>>, vector<1x1x256xf32>,
    %c2_62 = arith.constant 2 : index
    %c0_63 = arith.constant 0 : index
    %96 = memref.load %arg1[%c2_62, %c0_63] : memref<4x8xf32, #tpu.memory_space<smem>>
    %97 = vector.broadcast %96 : f32 to vector<256xf32>
    %98 = arith.mulf %97, %1 : vector<256xf32>
    %c2_64 = arith.constant 2 : index
    %c1_65 = arith.constant 1 : index
    %99 = memref.load %arg1[%c2_64, %c1_65] : memref<4x8xf32, #tpu.memory_space<smem>>
    %100 = vector.broadcast %99 : f32 to vector<256xf32>
    %101 = arith.mulf %100, %3 : vector<256xf32>
    %102 = arith.addf %98, %101 : vector<256xf32>
    %c2_66 = arith.constant 2 : index
    %c2_67 = arith.constant 2 : index
    %103 = memref.load %arg1[%c2_66, %c2_67] : memref<4x8xf32, #tpu.memory_space<smem>>
    %104 = vector.broadcast %103 : f32 to vector<256xf32>
    %105 = arith.mulf %104, %5 : vector<256xf32>
    %106 = arith.addf %102, %105 : vector<256xf32>
    %c2_68 = arith.constant 2 : index
    %c3_69 = arith.constant 3 : index
    %107 = memref.load %arg1[%c2_68, %c3_69] : memref<4x8xf32, #tpu.memory_space<smem>>
    %108 = vector.broadcast %107 : f32 to vector<256xf32>
    %109 = arith.mulf %108, %7 : vector<256xf32>
    %110 = arith.addf %106, %109 : vector<256xf32>
    %c2_70 = arith.constant 2 : index
    %c4_71 = arith.constant 4 : index
    %111 = memref.load %arg1[%c2_70, %c4_71] : memref<4x8xf32, #tpu.memory_space<smem>>
    %112 = vector.broadcast %111 : f32 to vector<256xf32>
    %113 = arith.mulf %112, %9 : vector<256xf32>
    %114 = arith.addf %110, %113 : vector<256xf32>
    %c2_72 = arith.constant 2 : index
    %c5_73 = arith.constant 5 : index
    %115 = memref.load %arg1[%c2_72, %c5_73] : memref<4x8xf32, #tpu.memory_space<smem>>
    %116 = vector.broadcast %115 : f32 to vector<256xf32>
    %117 = arith.mulf %116, %11 : vector<256xf32>
    %118 = arith.addf %114, %117 : vector<256xf32>
    %c2_74 = arith.constant 2 : index
    %c6_75 = arith.constant 6 : index
    %119 = memref.load %arg1[%c2_74, %c6_75] : memref<4x8xf32, #tpu.memory_space<smem>>
    %120 = vector.broadcast %119 : f32 to vector<256xf32>
    %121 = arith.mulf %120, %13 : vector<256xf32>
    %122 = arith.addf %118, %121 : vector<256xf32>
    %c2_76 = arith.constant 2 : index
    %c7_77 = arith.constant 7 : index
    %123 = memref.load %arg1[%c2_76, %c7_77] : memref<4x8xf32, #tpu.memory_space<smem>>
    %124 = vector.broadcast %123 : f32 to vector<256xf32>
    %125 = arith.mulf %124, %15 : vector<256xf32>
    %126 = arith.addf %122, %125 : vector<256xf32>
    %c2_78 = arith.constant 2 : index
    %127 = memref.load %arg2[%c2_78] : memref<4xf32, #tpu.memory_space<smem>>
    %128 = vector.broadcast %127 : f32 to vector<256xf32>
    %129 = arith.addf %126, %128 : vector<256xf32>
    %c0_79 = arith.constant 0 : index
    %c2_80 = arith.constant 2 : index
    %c0_81 = arith.constant 0 : index
    %130 = vector.load %arg4[%c0_79, %c2_80, %c0_81] : memref<1x4x256xf32, #tpu.memory_space<vmem>>, vector<1x1x256xf32>
    %131 = vector.shape_cast %130 : vector<1x1x256xf32> to vector<256xf32>
    %132 = arith.mulf %129, %131 : vector<256xf32>
    %c0_82 = arith.constant 0 : index
    %c2_83 = arith.constant 2 : index
    %c0_84 = arith.constant 0 : index
    %133 = vector.load %arg5[%c0_82, %c2_83, %c0_84] : memref<1x4x256xf32, #tpu.memory_space<vmem>>, vector<1x1x256xf32>
    %134 = vector.shape_cast %133 : vector<1x1x256xf32> to vector<256xf32>
    %135 = vector.shape_cast %132 : vector<256xf32> to vector<1x1x256xf32>
    tpu.vector_store %arg5[%c0_82, %c2_83, %c0_84], %135 {strides = array<i32>} : memref<1x4x256xf32, #tpu.memory_space<vmem>>, vector<1x1x256xf32>,
    %c3_85 = arith.constant 3 : index
    %c0_86 = arith.constant 0 : index
    %136 = memref.load %arg1[%c3_85, %c0_86] : memref<4x8xf32, #tpu.memory_space<smem>>
    %137 = vector.broadcast %136 : f32 to vector<256xf32>
    %138 = arith.mulf %137, %1 : vector<256xf32>
    %c3_87 = arith.constant 3 : index
    %c1_88 = arith.constant 1 : index
    %139 = memref.load %arg1[%c3_87, %c1_88] : memref<4x8xf32, #tpu.memory_space<smem>>
    %140 = vector.broadcast %139 : f32 to vector<256xf32>
    %141 = arith.mulf %140, %3 : vector<256xf32>
    %142 = arith.addf %138, %141 : vector<256xf32>
    %c3_89 = arith.constant 3 : index
    %c2_90 = arith.constant 2 : index
    %143 = memref.load %arg1[%c3_89, %c2_90] : memref<4x8xf32, #tpu.memory_space<smem>>
    %144 = vector.broadcast %143 : f32 to vector<256xf32>
    %145 = arith.mulf %144, %5 : vector<256xf32>
    %146 = arith.addf %142, %145 : vector<256xf32>
    %c3_91 = arith.constant 3 : index
    %c3_92 = arith.constant 3 : index
    %147 = memref.load %arg1[%c3_91, %c3_92] : memref<4x8xf32, #tpu.memory_space<smem>>
    %148 = vector.broadcast %147 : f32 to vector<256xf32>
    %149 = arith.mulf %148, %7 : vector<256xf32>
    %150 = arith.addf %146, %149 : vector<256xf32>
    %c3_93 = arith.constant 3 : index
    %c4_94 = arith.constant 4 : index
    %151 = memref.load %arg1[%c3_93, %c4_94] : memref<4x8xf32, #tpu.memory_space<smem>>
    %152 = vector.broadcast %151 : f32 to vector<256xf32>
    %153 = arith.mulf %152, %9 : vector<256xf32>
    %154 = arith.addf %150, %153 : vector<256xf32>
    %c3_95 = arith.constant 3 : index
    %c5_96 = arith.constant 5 : index
    %155 = memref.load %arg1[%c3_95, %c5_96] : memref<4x8xf32, #tpu.memory_space<smem>>
    %156 = vector.broadcast %155 : f32 to vector<256xf32>
    %157 = arith.mulf %156, %11 : vector<256xf32>
    %158 = arith.addf %154, %157 : vector<256xf32>
    %c3_97 = arith.constant 3 : index
    %c6_98 = arith.constant 6 : index
    %159 = memref.load %arg1[%c3_97, %c6_98] : memref<4x8xf32, #tpu.memory_space<smem>>
    %160 = vector.broadcast %159 : f32 to vector<256xf32>
    %161 = arith.mulf %160, %13 : vector<256xf32>
    %162 = arith.addf %158, %161 : vector<256xf32>
    %c3_99 = arith.constant 3 : index
    %c7_100 = arith.constant 7 : index
    %163 = memref.load %arg1[%c3_99, %c7_100] : memref<4x8xf32, #tpu.memory_space<smem>>
    %164 = vector.broadcast %163 : f32 to vector<256xf32>
    %165 = arith.mulf %164, %15 : vector<256xf32>
    %166 = arith.addf %162, %165 : vector<256xf32>
    %c3_101 = arith.constant 3 : index
    %167 = memref.load %arg2[%c3_101] : memref<4xf32, #tpu.memory_space<smem>>
    %168 = vector.broadcast %167 : f32 to vector<256xf32>
    %169 = arith.addf %166, %168 : vector<256xf32>
    %c0_102 = arith.constant 0 : index
    %c3_103 = arith.constant 3 : index
    %c0_104 = arith.constant 0 : index
    %170 = vector.load %arg4[%c0_102, %c3_103, %c0_104] : memref<1x4x256xf32, #tpu.memory_space<vmem>>, vector<1x1x256xf32>
    %171 = vector.shape_cast %170 : vector<1x1x256xf32> to vector<256xf32>
    %172 = arith.mulf %169, %171 : vector<256xf32>
    %c0_105 = arith.constant 0 : index
    %c3_106 = arith.constant 3 : index
    %c0_107 = arith.constant 0 : index
    %173 = vector.load %arg5[%c0_105, %c3_106, %c0_107] : memref<1x4x256xf32, #tpu.memory_space<vmem>>, vector<1x1x256xf32>
    %174 = vector.shape_cast %173 : vector<1x1x256xf32> to vector<256xf32>
    %175 = vector.shape_cast %172 : vector<256xf32> to vector<1x1x256xf32>
    tpu.vector_store %arg5[%c0_105, %c3_106, %c0_107], %175 {strides = array<i32>} : memref<1x4x256xf32, #tpu.memory_space<vmem>>, vector<1x1x256xf32>,
    return
  }
  func.func @transform_0(%arg0: i32) -> (i32, i32) {
    %c0_i32 = arith.constant 0 : i32
    %c0_i32_0 = arith.constant 0 : i32
    %c0_i32_1 = arith.constant 0 : i32
    return %c0_i32, %c0_i32_0 : i32, i32
  }
  func.func @transform_1(%arg0: i32) -> i32 {
    %c0_i32 = arith.constant 0 : i32
    %c0_i32_0 = arith.constant 0 : i32
    return %c0_i32 : i32
  }
  func.func @transform_2(%arg0: i32) -> (i32, i32, i32) {
    %c0_i32 = arith.constant 0 : i32
    %c0_i32_0 = arith.constant 0 : i32
    %c0_i32_1 = arith.constant 0 : i32
    return %arg0, %c0_i32, %c0_i32_0 : i32, i32, i32
  }
  func.func @transform_3(%arg0: i32) -> (i32, i32, i32) {
    %c0_i32 = arith.constant 0 : i32
    %c0_i32_0 = arith.constant 0 : i32
    %c0_i32_1 = arith.constant 0 : i32
    return %arg0, %c0_i32, %c0_i32_0 : i32, i32, i32
  }
  func.func @transform_4(%arg0: i32) -> (i32, i32, i32) {
    %c0_i32 = arith.constant 0 : i32
    %c0_i32_0 = arith.constant 0 : i32
    %c0_i32_1 = arith.constant 0 : i32
    return %arg0, %c0_i32, %c0_i32_0 : i32, i32, i32
  }
}

</mosaic_0001>

<bundles_post_ra>
// kernel: model_forward.1
= control target key start
LH: loop header
LB: loop body
LE: loop exit
PB: predicated region body
PF: predicated region fallthrough
CT: control target
= control target key end

     0   :  { %9 = vsyncpa [#allocation3], 0  ;;  %s887_s0 = inlined_call_operand.vmem [shape: f32[4,8], index: 0, kind: input, shape index: {}]   ;;  %s888_s1 = inlined_call_operand.vmem [shape: f32[4], index: 1, kind: input, shape index: {}]   ;;  %s889_s2 = inlined_call_operand.vmem [shape: f32[2,8,256], index: 2, kind: input, shape index: {}]   ;;  %s890_s3 = inlined_call_operand.vmem [shape: f32[2,4,256], index: 3, kind: input, shape index: {}]   ;;  %s891_s4 = inlined_call_operand.vmem [shape: f32[2,4,256], index: 4, kind: output, shape index: {}]  }
   0x1   :  { %10 = vsyncpa [#allocation5], 0  ;;  %s676_s15 = smov 0  }
   0x2 LB: > { %s682_s16 = sadd.s32 4294967295, %s647_s15   ;;  %p509_p0 = scmp.ge.s32.totalorder %s647_s15, 1  ;;  %s647_s15 = sphi %s676_s15, %s16_s15  }
   0x3   : > { %p141_p1 = scmp.lt.s32.totalorder %s647_s15, 3  ;;  %s154_s19 = sshll.u32 %s887_s0, 4  ;;  %s155_s19 = int_to_ptr.vmem [resolvable:$true] %s154_s19 }
   0x4   : > { %p892_p3 = scmp.eq.s32.totalorder %s682_s16, 0  ;;  %s165_s23 = sshll.u32 %s888_s1, 4  ;;  %s166_s23 = int_to_ptr.vmem [resolvable:$true] %s165_s23 }
   0x5   : > { %p689_p2 = pnand %p509_p0, %p141_p1  ;;  %s603_s25 = scalar_lea.vmem %s155_s19, 64 }
   0x6   : > { %p604_p6 = scmp.ne.s32.totalorder %s155_s19, %s603_s25  ;;  %p611_p10 = scmp.lt.s32.totalorder %s155_s19, %s155_s19 }
   0x7   : > { %s894_s20 = scalar_select %p689_p2, 1, 0 }
   0x8   : > { %p582_p4 = pneg %p689_p2  ;;  %p612_p11 = scmp.lt.s32.totalorder %s603_s25, %s603_s25 }
   0xa   : > { %p701_p5 = pnand %p892_p3, %p582_p4  ;;  %p613_p12 = por %p612_p11, %p611_p10 }
   0xc   : > { %p605_p7 = pneg %p701_p5 }
   0xe   : > { %p606_p8 = pnand %p605_p7, %p604_p6 }
  0x10   : > { %p607_p9 = pneg %p606_p8 }
  0x12   : > { %p614_p13 = pnand %p613_p12, %p607_p9 }
  0x14   : > { %617 = shalt.err (!%p614_p13)
}
  0x15   : > { %s649_s26 = smov [#allocation2]   ;;  %s618_s27 = scalar_lea.vmem %s166_s23, 16 }
  0x16   : > { %585 = dma.vmem_to_smem (!%p701_p5), %s155_s19, 64, %s649_s26, [#allocation3]  }
  0x17   : > { %p619_p0 = scmp.ne.s32.totalorder %s166_s23, %s618_s27  ;;  %p626_p3 = scmp.lt.s32.totalorder %s166_s23, %s166_s23 }
  0x18   : > { %p627_p2 = scmp.lt.s32.totalorder %s618_s27, %s618_s27 }
  0x19   : > { %p621_p1 = pnand %p619_p0, %p605_p7 }
  0x1a   : > { %p628_p6 = por %p627_p2, %p626_p3 }
  0x1b   : > { %p622_p4 = pneg %p621_p1 }
  0x1d   : > { %p629_p8 = pnand %p628_p6, %p622_p4 }
  0x1f   : > { %632 = shalt.err (!%p629_p8)
}
  0x20   : > { %s650_s28 = smov [#allocation4]   ;;  %p896_p9 = scmp.ne.s32.totalorder %s894_s20, 0 }
  0x21   : > { %588 = dma.vmem_to_smem (!%p701_p5), %s166_s23, 16, %s650_s28, [#allocation5]  }
  0x22   : > { %194 = sbr.rel (%p896_p9) target bundleno = 96 (0x60), region = 36  ;;  %p897_p10 = scmp.eq.s32.totalorder (!%p896_p9), %s682_s16, 0 }
  0x29   : > { %638 = dma.done.wait (%p897_p10), [#allocation3], 64   ;;  %p898_p11 = pmov %p897_p10 }
  0x2a   : > { %p899_p7 = pmov %p897_p10 }
  0x2b   : > { %640 = vsyncadd (%p898_p11), [#allocation3], 4294967232 }
  0x2c   : > { %642 = dma.done.wait (%p899_p7), [#allocation5], 16   ;;  %p900_p2 = pmov %p899_p7 }
  0x2e   : > { %644 = vsyncadd (%p900_p2), [#allocation5], 4294967280 }
  0x2f   : > { %204 = sfence }
  0x30   : > { %p230_p3 = scmp.lt.s32.totalorder %s682_s16, 1  ;;  %s260_s29 = sld [smem:[#allocation2]]  ;;  %v296_v27 = vlaneseq }
  0x31   : > { %s529_s30 = sld [smem:[#allocation2 + $0x1]]  ;;  %s530_s5 = sld [smem:[#allocation2 + $0x2]] }
  0x32   : > { %s904_s16 = smov (!%p230_p3, %s682_s16), 1  ;;  %s531_s6 = sld [smem:[#allocation2 + $0x3]]  ;;  %vm792_vm0 = vcmp.lt.s32.totalorder %v296_v27, 256 }
  0x33   : > { %s532_s7 = sld [smem:[#allocation2 + $0x4]]  ;;  %s571_s8 = sshll.u32 %s904_s16, 4 }
  0x34   : > { %s234_s11 = scalar_lea.vmem %s889_s2, %s571_s8  ;;  %s533_s12 = sld [smem:[#allocation2 + $0x5]] }
  0x35   : > { %v729_v0 = vld [vmem:[%s234_s11] ss:$8 sm:$0x3]  ;;  %v731_v1 = vld [vmem:[%s234_s11 + $0x1] ss:$8 sm:$0x3] }
  0x36   : > { %v261_v2 = vstv %s260_s29  ;;  %v733_v3 = vld [vmem:[%s234_s11 + $0x2] ss:$8 sm:$0x3]  ;;  %v735_v4 = vld [vmem:[%s234_s11 + $0x3] ss:$8 sm:$0x3] }
  0x37   : > { %v262_v5 = vmul.f32 %v261_v2, %v729_v0  ;;  %v264_v6 = vstv %s529_s30  ;;  %v268_v7 = vstv %s530_s5  ;;  %v740_v10 = vld [vmem:[%s234_s11 + $0x4] ss:$8 sm:$0x3]  ;;  %s534_s13 = sld [smem:[#allocation2 + $0x6]]  ;;  %s572_s14 = sshll.u32 %s904_s16, 3 }
  0x38   : > { %v265_v8 = vmul.f32 %v731_v1, %v264_v6  ;;  %v269_v9 = vmul.f32 %v733_v3, %v268_v7  ;;  %v272_v11 = vstv %s531_s6  ;;  %s535_s17 = sld [smem:[#allocation2 + $0x7]]  ;;  %v744_v15 = vld [vmem:[%s234_s11 + $0x5] ss:$8 sm:$0x3]  ;;  %s749_s18 = sld [smem:[#allocation4]] }
  0x39   : > { %v276_v12 = vstv %s532_s7  ;;  %v273_v14 = vmul.f32 %v735_v4, %v272_v11  ;;  %v746_v16 = vld [vmem:[%s234_s11 + $0x6] ss:$8 sm:$0x3]  ;;  %s536_s19 = sld [smem:[#allocation2 + $0x80]]  ;;  %s537_s20 = sld [smem:[#allocation2 + $0x81]] }
  0x3a   : > { %v266_v13 = vadd.f32 %v265_v8, %v262_v5  ;;  %v277_v18 = vmul.f32 %v740_v10, %v276_v12  ;;  %v751_v19 = vld [vmem:[%s234_s11 + $0x7] ss:$8 sm:$0x3]  ;;  %s538_s21 = sld [smem:[#allocation2 + $0x82]]  ;;  %s753_s22 = sld [smem:[#allocation2 + $0x83]]  ;;  %v280_v22 = vstv %s533_s12 }
  0x3b   : > { %s755_s23 = sld [smem:[#allocation2 + $0x84]]  ;;  %s757_s24 = sld [smem:[#allocation2 + $0x85]]  ;;  %v281_v24 = vmul.f32 %v744_v15, %v280_v22 }
  0x3c   : > { %v270_v17 = vadd.f32 %v269_v9, %v266_v13  ;;  %s759_s25 = sld [smem:[#allocation2 + $0x86]]  ;;  %s761_s26 = sld [smem:[#allocation2 + $0x87]] }
  0x3d   : > { %v284_v23 = vstv %s534_s13  ;;  %s768_s29 = scalar_lea.vmem %s890_s3, %s572_s14  ;;  %s772_s30 = sld [smem:[#allocation2 + $0x100]] }
  0x3e   : > { %v274_v20 = vadd.f32 %v273_v14, %v270_v17  ;;  %v285_v25 = vmul.f32 %v746_v16, %v284_v23  ;;  %v288_v26 = vstv %s535_s17  ;;  %s775_s5 = sld [smem:[#allocation2 + $0x101]]  ;;  %s777_s6 = sld [smem:[#allocation2 + $0x102]]  ;;  %v292_v41 = vstv %s749_s18  ;;  %v294_v42 = vld [vmem:[%s768_s29] ss:$4 sm:$0x3] }
  0x3f   : > { %v289_v28 = vmul.f32 %v751_v19, %v288_v26  ;;  %v302_v29 = vstv %s536_s19  ;;  %v305_v32 = vstv %s537_s20  ;;  %s780_s7 = sld [smem:[#allocation2 + $0x103]]  ;;  %s782_s8 = sld [smem:[#allocation2 + $0x104]] }
  0x40   : > { %v278_v21 = vadd.f32 %v277_v18, %v274_v20  ;;  %v303_v31 = vmul.f32 %v302_v29, %v729_v0  ;;  %v309_v33 = vstv %s538_s21  ;;  %v306_v34 = vmul.f32 %v731_v1, %v305_v32  ;;  %s788_s9 = sld [smem:[#allocation4 + $0x1]]  ;;  %s790_s10 = sld [smem:[#allocation2 + $0x105]] }
  0x41   : > { %v310_v35 = vmul.f32 %v733_v3, %v309_v33  ;;  %v313_v36 = vstv %s753_s22  ;;  %v317_v37 = vstv %s755_s23  ;;  %v321_v40 = vstv %s757_s24  ;;  %s797_s11 = sld [smem:[#allocation2 + $0x106]]  ;;  %s803_s12 = sld [smem:[#allocation2 + $0x107]] }
  0x42   : > { %v282_v30 = vadd.f32 %v281_v24, %v278_v21  ;;  %v307_v43 = vadd.f32 %v306_v34, %v303_v31  ;;  %v314_v44 = vmul.f32 %v735_v4, %v313_v36  ;;  %v318_v45 = vmul.f32 %v740_v10, %v317_v37  ;;  %s805_s13 = sld [smem:[#allocation2 + $0x180]]  ;;  %s810_s17 = sld [smem:[#allocation2 + $0x181]] }
  0x43   : > { %v322_v47 = vmul.f32 %v744_v15, %v321_v40  ;;  %v325_v48 = vstv %s759_s25  ;;  %v329_v49 = vstv %s761_s26  ;;  %s812_s18 = sld [smem:[#allocation2 + $0x182]]  ;;  %v341_v51 = vstv %s772_s30  ;;  %s817_s19 = sld [smem:[#allocation2 + $0x183]] }
  0x44   : > { %v286_v38 = vadd.f32 %v285_v25, %v282_v30  ;;  %v311_v50 = vadd.f32 %v310_v35, %v307_v43  ;;  %v344_v52 = vstv %s775_s5  ;;  %v348_v53 = vstv %s777_s6  ;;  %s819_s20 = sld [smem:[#allocation2 + $0x184]]  ;;  %s829_s23 = scalar_lea.vmem %s891_s4, %s572_s14 }
  0x45   : > { %v342_v55 = vmul.f32 %v341_v51, %v729_v0  ;;  %v345_v56 = vmul.f32 %v731_v1, %v344_v52  ;;  %v349_v57 = vmul.f32 %v733_v3, %v348_v53  ;;  %v352_v59 = vstv %s780_s7  ;;  %s834_s24 = sld [smem:[#allocation2 + $0x185]]  ;;  %s840_s16 = sld [smem:[#allocation2 + $0x186]] }
  0x46   : > { %v290_v46 = vadd.f32 %v289_v28, %v286_v38  ;;  %v315_v58 = vadd.f32 %v314_v44, %v311_v50  ;;  %v356_v60 = vstv %s782_s8  ;;  %v360_v61 = vstv %s790_s10  ;;  %s848_s14 = sld [smem:[#allocation4 + $0x2]]  ;;  %s853_s25 = sld [smem:[#allocation2 + $0x187]] }
  0x47   : > { %v346_v63 = vadd.f32 %v345_v56, %v342_v55  ;;  %v353_v2 = vmul.f32 %v735_v4, %v352_v59  ;;  %v326_v6 = vmul.f32 %v746_v16, %v325_v48  ;;  %v330_v7 = vmul.f32 %v751_v19, %v329_v49  ;;  %s566_s26 = sld [smem:[#allocation4 + $0x3]] }
  0x48   : > { %v293_v54 = vadd.f32 %v292_v41, %v290_v46  ;;  %v319_v5 = vadd.f32 %v318_v45, %v315_v58  ;;  %v333_v8 = vstv %s788_s9  ;;  %v357_v11 = vmul.f32 %v740_v10, %v356_v60 }
  0x49   : > { %v350_v9 = vadd.f32 %v349_v57, %v346_v63  ;;  %v361_v12 = vmul.f32 %v744_v15, %v360_v61  ;;  %v364_v13 = vstv %s797_s11  ;;  %v380_v17 = vstv %s805_s13 }
  0x4a   : > { %v295_v62 = vmul.f32 %v294_v42, %v293_v54  ;;  %v323_v14 = vadd.f32 %v322_v47, %v319_v5  ;;  %v383_v18 = vstv %s810_s17  ;;  %v387_v20 = vstv %s812_s18  ;;  %v567_v54 = vld [vmem:[%s768_s29 + $0x3] ss:$4 sm:$0x3] }
  0x4b   : > { %v354_v21 = vadd.f32 %v353_v2, %v350_v9  ;;  %v381_v22 = vmul.f32 %v380_v17, %v729_v0  ;;  %v384_v23 = vmul.f32 %v731_v1, %v383_v18  ;;  %v388_v24 = vmul.f32 %v733_v3, %v387_v20  ;;  %v545_v0 = vld [vmem:[%s768_s29 + $0x1] ss:$4 sm:$0x3] }
  0x4c   : > { %300 = vst.msk [vmem:[%s829_s23] ss:$4 sm:$0x3] %vm792_vm0, %v295_v62  ;;  %v327_v25 = vadd.f32 %v326_v6, %v323_v14  ;;  %v368_v26 = vstv %s803_s12  ;;  %v391_v27 = vstv %s817_s19  ;;  %v395_v28 = vstv %s819_s20 }
  0x4d   : > { %v358_v29 = vadd.f32 %v357_v11, %v354_v21  ;;  %v365_v30 = vmul.f32 %v746_v16, %v364_v13  ;;  %v385_v31 = vadd.f32 %v384_v23, %v381_v22  ;;  %v392_v32 = vmul.f32 %v735_v4, %v391_v27 }
  0x4e   : > { %v331_v33 = vadd.f32 %v330_v7, %v327_v25  ;;  %v399_v34 = vstv %s834_s24  ;;  %v369_v1 = vmul.f32 %v751_v19, %v368_v26  ;;  %v396_v36 = vmul.f32 %v740_v10, %v395_v28  ;;  %v556_v10 = vld [vmem:[%s768_s29 + $0x2] ss:$4 sm:$0x3] }
  0x4f   : > { %v362_v35 = vadd.f32 %v361_v12, %v358_v29  ;;  %v389_v3 = vadd.f32 %v388_v24, %v385_v31  ;;  %v403_v38 = vstv %s840_s16  ;;  %v400_v4 = vmul.f32 %v744_v15, %v399_v34 }
  0x50   : > { %v334_v37 = vadd.f32 %v333_v8, %v331_v33  ;;  %v372_v43 = vstv %s848_s14  ;;  %v407_v44 = vstv %s853_s25  ;;  %v404_v47 = vmul.f32 %v746_v16, %v403_v38 }
  0x51   : > { %v366_v40 = vadd.f32 %v365_v30, %v362_v35  ;;  %v393_v41 = vadd.f32 %v392_v32, %v389_v3  ;;  %v408_v50 = vmul.f32 %v751_v19, %v407_v44  ;;  %v411_v15 = vstv %s566_s26 }
  0x52   : > { %v337_v42 = vmul.f32 %v545_v0, %v334_v37 }
  0x53   : > { %v370_v45 = vadd.f32 %v369_v1, %v366_v40  ;;  %v397_v46 = vadd.f32 %v396_v36, %v393_v41 }
  0x54   : > { %546 = vst.msk [vmem:[%s829_s23 + $0x1] ss:$4 sm:$0x3] %vm792_vm0, %v337_v42 }
  0x55   : > { %v373_v48 = vadd.f32 %v372_v43, %v370_v45  ;;  %v401_v49 = vadd.f32 %v400_v4, %v397_v46 }
  0x57   : > { %v376_v51 = vmul.f32 %v556_v10, %v373_v48  ;;  %v405_v52 = vadd.f32 %v404_v47, %v401_v49 }
  0x59   : > { %557 = vst.msk [vmem:[%s829_s23 + $0x2] ss:$4 sm:$0x3] %vm792_vm0, %v376_v51  ;;  %v409_v53 = vadd.f32 %v408_v50, %v405_v52 }
  0x5b   : > { %v412_v55 = vadd.f32 %v411_v15, %v409_v53 }
  0x5d   : > { %v415_v56 = vmul.f32 %v567_v54, %v412_v55 }
  0x5f   : > { %568 = vst.msk [vmem:[%s829_s23 + $0x3] ss:$4 sm:$0x3] %vm792_vm0, %v415_v56 }
  0x60 PF: > { %s16_s15 = sadd.s32 1, %s647_s15  }
  0x61   : > { %p13_p5 = scmp.ge.s32.totalorder %s16_s15, 4  }
  0x63   :  { %15 = sbr.rel (!%p13_p5) target bundleno = 2 (0x2), region = 91 }
  0x6a   :  { %439 = vsyncpa [#allocation3], 1 }
  0x6b   :  { %441 = vsyncpa [#allocation3 + $0x1], 1 }
  0x6c   :  { %442 = vsyncpa [#allocation5], 1 }

</bundles_post_ra>
